<compile_context>
chip_gen: v7x
topology: tpu7x:2x2x1
jax: 0.10.0
libtpu: 0.0.40
codegen_flags: <defaults>
</compile_context>

<pallas_src>
import functools

import jax
import jax.numpy as jnp
from jax.experimental import pallas as pl
from jax.experimental.pallas import tpu as pltpu

# ---- module configuration (mirrors XC_L_POL.__init__) ----------------------
MAX_ORDER = 4
UEG_LIMIT = True
LOB = 1.804
USE = (1, 2)          # n_input = 2
SDECAY = False        # decay == 1 in forward
N_FREEPAR = (MAX_ORDER + 1) ** len(USE) - 1   # 24

# ---- tiling configuration ---------------------------------------------------
LANE_MAX = 2048       # max lane width of the flattened slab (multiple of 128)
TR_MAX = 128          # max rows per tile -> 128*2048*4B = 1 MiB per stream (v5e-safe)
MIN_STEPS = 4         # prefer >= 4 grid steps (>= 2 per v7x TensorCore)


def _round_up(x, m):
    return ((x + m - 1) // m) * m


def _pick_lanes(total):
    """Largest multiple of 128 (<= LANE_MAX) dividing total with rows % 8 == 0."""
    start = (min(LANE_MAX, total) // 128) * 128
    for lanes in range(start, 127, -128):
        if total % lanes == 0 and (total // lanes) % 8 == 0:
            return lanes
    return 0


def _pick_tr(rows):
    """Largest multiple-of-8 divisor of rows (<= TR_MAX) giving >=MIN_STEPS even steps,
    falling back to the largest dividing tile size (floor 8)."""
    best = None
    tr = min(TR_MAX, rows)
    while tr >= 8:
        if rows % tr == 0:
            steps = rows // tr
            if steps >= MIN_STEPS and steps % 2 == 0:
                return tr
            if best is None:
                best = tr
        tr -= 8
    return best if best is not None else 8


def _xc_l_pol_kernel(gs, pars_ref, sa_ref, o_ref):
    """gs: python float; pars_ref: SMEM (24,); sa_ref: VMEM (2, TR, LANES); o: (TR, LANES)."""
    M = MAX_ORDER

    # Hoist all 24 scalar coefficient reads before any vector work so the scalar
    # path stays out of the unrolled VALU chain.
    coef = [pars_ref[k] for k in range(N_FREEPAR)]

    # Coefficient of u1^i * u2^j is pars[i*(M+1) + j - 1] (UEG limit drops (i,j)=(0,0)).
    def c(i, j):
        return coef[i * (M + 1) + j - 1]

    s = sa_ref[0]
    a = sa_ref[1]

    # u1 = gs*s^2/(1+gs*s^2) = 1 - 1/(1+gs*s^2);  u2 = (a-1)/(a+1) = 1 - 2/(a+1)
    # Approx EUP reciprocal + one Newton step (r <- r*(2 - d*r)): full accuracy for
    # the 1e-5 tolerance while keeping the divide off the binding VALU slot.
    d1 = 1.0 + gs * s * s
    r1 = pl.reciprocal(d1, approx=True)
    r1 = r1 * (2.0 - d1 * r1)
    u1 = 1.0 - r1

    d2 = a + 1.0
    r2 = pl.reciprocal(d2, approx=True)
    r2 = r2 * (2.0 - d2 * r2)
    u2 = 1.0 - 2.0 * r2

    # Inner Horner in u2 for i = 0 (j runs 1..M): P0 = u2*(c01 + u2*(c02 + ...))
    p0 = c(0, M)
    for j in range(M - 1, 0, -1):
        p0 = p0 * u2 + c(0, j)
    p0 = p0 * u2

    # Outer Horner in u1: acc = P0 + u1*(P1 + u1*(P2 + u1*(P3 + u1*P4)))
    acc = None
    for i in range(M, 0, -1):
        pi = c(i, M)
        for j in range(M - 1, -1, -1):
            pi = pi * u2 + c(i, j)
        acc = pi if acc is None else acc * u1 + pi
    acc = acc * u1 + p0

    # sdecay=False -> decay == 1, and (acc + 1) * 1 - 1 == acc (no-op epilogue dropped).
    # TODO(synk): sdecay=True branch (1 - exp(-gamma_dec / sqrt(rho[...,use[0]] + 1e-8)))
    #             is not wired in; this config never uses it.
    o_ref[...] = acc


def xc_l_pol_forward(rho, pars, gamma_s=0.273):
    """rho: (B, N, F) float32; pars: (24,); gamma_s: concrete scalar. Returns squeezed (B, N)."""
    rho = jnp.asarray(rho, jnp.float32)
    B, N, _ = rho.shape
    total = B * N

    # gamma_s is fixed at module-init time -> bake as a trace-time constant
    # (requires a concrete value; this matches the PyTorch ctor's 0.273).
    gs = float(gamma_s)

    # Parameter normalization (24 scalars -> stays in JAX).
    pars = jnp.asarray(pars, jnp.float32)
    pars_n = (pars / jnp.sum(pars) * (LOB - 1.0)).astype(jnp.float32)

    # Single fused prepass: one read of rho, one write of the (2, total) feature-major
    # stream (XLA fuses both slices + the stack into a single pass).
    sa = jnp.stack([jnp.reshape(rho[..., USE[0]], (-1,)),
                    jnp.reshape(rho[..., USE[1]], (-1,))], axis=0)   # (2, total)

    # ---- lane/sublane-dense re-tiling, preferring a no-padding factorization -----
    lanes = _pick_lanes(total)
    if lanes:
        rows_p = total // lanes
        tr = _pick_tr(rows_p)
        padded = total
        sa3 = jnp.reshape(sa, (2, rows_p, lanes))
    else:
        # Fallback: pad to a (rows_p, lanes) slab (only when B*N has no good factorization).
        lanes = LANE_MAX
        while lanes > 128 and total < lanes * 8:
            lanes //= 2
        rows = -(-total // lanes)                                   # ceil
        tr = min(TR_MAX, max(8, _round_up(-(-rows // MIN_STEPS), 8)))
        rows_p = _round_up(max(rows, tr), tr)
        padded = rows_p * lanes
        sa3 = jnp.reshape(jnp.pad(sa, ((0, 0), (0, padded - total))), (2, rows_p, lanes))

    out2d = pl.pallas_call(
        functools.partial(_xc_l_pol_kernel, gs),
        out_shape=jax.ShapeDtypeStruct((rows_p, lanes), jnp.float32),
        grid=(rows_p // tr,),
        in_specs=[
            pl.BlockSpec(memory_space=pltpu.MemorySpace.SMEM),      # pars (normalized)
            pl.BlockSpec((2, tr, lanes), lambda r: (0, r, 0)),      # [s; a] tile
        ],
        out_specs=pl.BlockSpec((tr, lanes), lambda r: (r, 0)),
        compiler_params=pltpu.CompilerParams(
            dimension_semantics=("parallel",),
            vmem_limit_bytes=32 << 20),
        cost_estimate=pl.CostEstimate(
            flops=60 * rows_p * lanes,
            transcendentals=2 * rows_p * lanes,
            bytes_accessed=12 * rows_p * lanes),
    )(pars_n, sa3)

    if padded == total:
        out = jnp.reshape(out2d, (B, N))                            # free reshape
    else:
        out = jnp.reshape(jnp.reshape(out2d, (-1,))[:total], (B, N))
    return jnp.squeeze(out)


def _reference(rho, pars, gamma_s):
    s = rho[..., USE[0]]
    a = rho[..., USE[1]]
    u1 = gamma_s * s**2 / (1.0 + gamma_s * s**2)
    u2 = (a - 1.0) / (a + 1.0)
    feats = jnp.stack([u1**i * u2**j
                       for i in range(MAX_ORDER + 1)
                       for j in range(MAX_ORDER + 1)], axis=-1)[..., 1:]
    p = pars / jnp.sum(pars) * (LOB - 1.0)
    return jnp.squeeze((jnp.einsum('i,...i->...', p, feats) + 1.0) * 1.0 - 1.0)


if __name__ == "__main__":
    key = jax.random.PRNGKey(0)
    B, N, F = 2, 4096, 8        # (spin channels, grid points, descriptors)
    # positive descriptors (densities / reduced gradients); keeps (a+1) away from 0
    rho = jax.random.uniform(key, (B, N, F), jnp.float32, minval=0.1, maxval=2.0)

    # deterministic parameter init, as in XC_L_POL.__init__ (ueg_limit=True)
    pars = jnp.full((N_FREEPAR,), 0.1, jnp.float32)             # [0.1] * 24
    gamma_s = 0.273

    out = jax.block_until_ready(xc_l_pol_forward(rho, pars, gamma_s))
    ref = _reference(rho, pars, gamma_s)
    assert out.shape == ref.shape
    assert jnp.allclose(out, ref, atol=1e-5, rtol=1e-5)
    print("KERNEL_OK")
</pallas_src>

<mosaic_0001>
module attributes {stable_mosaic.version = 11 : i64} {
  func.func @_xc_l_pol_kernel(%arg0: i32, %arg1: memref<24xf32, #tpu.memory_space<smem>>, %arg2: memref<2x8x1024xf32, #tpu.memory_space<vmem>>, %arg3: memref<8x1024xf32, #tpu.memory_space<vmem>>) attributes {dimension_semantics = [#tpu.dimension_semantics<parallel>], iteration_bounds = array<i64: 1>, scalar_prefetch = 0 : i64, scratch_operands = 0 : i64, tpu.core_type = #tpu.core_type<tc>, window_params = [{transform_indices = @transform_0, window_bounds = array<i64: 24>}, {transform_indices = @transform_1, window_bounds = array<i64: 2, 8, 1024>}, {transform_indices = @transform_2, window_bounds = array<i64: 8, 1024>}]} {
    %c0 = arith.constant 0 : index
    %0 = memref.load %arg1[%c0] : memref<24xf32, #tpu.memory_space<smem>>
    %c1 = arith.constant 1 : index
    %1 = memref.load %arg1[%c1] : memref<24xf32, #tpu.memory_space<smem>>
    %c2 = arith.constant 2 : index
    %2 = memref.load %arg1[%c2] : memref<24xf32, #tpu.memory_space<smem>>
    %c3 = arith.constant 3 : index
    %3 = memref.load %arg1[%c3] : memref<24xf32, #tpu.memory_space<smem>>
    %c4 = arith.constant 4 : index
    %4 = memref.load %arg1[%c4] : memref<24xf32, #tpu.memory_space<smem>>
    %c5 = arith.constant 5 : index
    %5 = memref.load %arg1[%c5] : memref<24xf32, #tpu.memory_space<smem>>
    %c6 = arith.constant 6 : index
    %6 = memref.load %arg1[%c6] : memref<24xf32, #tpu.memory_space<smem>>
    %c7 = arith.constant 7 : index
    %7 = memref.load %arg1[%c7] : memref<24xf32, #tpu.memory_space<smem>>
    %c8 = arith.constant 8 : index
    %8 = memref.load %arg1[%c8] : memref<24xf32, #tpu.memory_space<smem>>
    %c9 = arith.constant 9 : index
    %9 = memref.load %arg1[%c9] : memref<24xf32, #tpu.memory_space<smem>>
    %c10 = arith.constant 10 : index
    %10 = memref.load %arg1[%c10] : memref<24xf32, #tpu.memory_space<smem>>
    %c11 = arith.constant 11 : index
    %11 = memref.load %arg1[%c11] : memref<24xf32, #tpu.memory_space<smem>>
    %c12 = arith.constant 12 : index
    %12 = memref.load %arg1[%c12] : memref<24xf32, #tpu.memory_space<smem>>
    %c13 = arith.constant 13 : index
    %13 = memref.load %arg1[%c13] : memref<24xf32, #tpu.memory_space<smem>>
    %c14 = arith.constant 14 : index
    %14 = memref.load %arg1[%c14] : memref<24xf32, #tpu.memory_space<smem>>
    %c15 = arith.constant 15 : index
    %15 = memref.load %arg1[%c15] : memref<24xf32, #tpu.memory_space<smem>>
    %c16 = arith.constant 16 : index
    %16 = memref.load %arg1[%c16] : memref<24xf32, #tpu.memory_space<smem>>
    %c17 = arith.constant 17 : index
    %17 = memref.load %arg1[%c17] : memref<24xf32, #tpu.memory_space<smem>>
    %c18 = arith.constant 18 : index
    %18 = memref.load %arg1[%c18] : memref<24xf32, #tpu.memory_space<smem>>
    %c19 = arith.constant 19 : index
    %19 = memref.load %arg1[%c19] : memref<24xf32, #tpu.memory_space<smem>>
    %c20 = arith.constant 20 : index
    %20 = memref.load %arg1[%c20] : memref<24xf32, #tpu.memory_space<smem>>
    %c21 = arith.constant 21 : index
    %21 = memref.load %arg1[%c21] : memref<24xf32, #tpu.memory_space<smem>>
    %c22 = arith.constant 22 : index
    %22 = memref.load %arg1[%c22] : memref<24xf32, #tpu.memory_space<smem>>
    %c23 = arith.constant 23 : index
    %23 = memref.load %arg1[%c23] : memref<24xf32, #tpu.memory_space<smem>>
    %c0_0 = arith.constant 0 : index
    %c0_1 = arith.constant 0 : index
    %c0_2 = arith.constant 0 : index
    %24 = vector.load %arg2[%c0_0, %c0_1, %c0_2] : memref<2x8x1024xf32, #tpu.memory_space<vmem>>, vector<1x8x1024xf32>
    %25 = vector.shape_cast %24 : vector<1x8x1024xf32> to vector<8x1024xf32>
    %c1_3 = arith.constant 1 : index
    %c0_4 = arith.constant 0 : index
    %c0_5 = arith.constant 0 : index
    %26 = vector.load %arg2[%c1_3, %c0_4, %c0_5] : memref<2x8x1024xf32, #tpu.memory_space<vmem>>, vector<1x8x1024xf32>
    %27 = vector.shape_cast %26 : vector<1x8x1024xf32> to vector<8x1024xf32>
    %cst = arith.constant 2.730000e-01 : f32
    %28 = vector.broadcast %cst : f32 to vector<8x1024xf32>
    %29 = arith.mulf %28, %25 : vector<8x1024xf32>
    %30 = arith.mulf %29, %25 : vector<8x1024xf32>
    %cst_6 = arith.constant 1.000000e+00 : f32
    %31 = vector.broadcast %cst_6 : f32 to vector<8x1024xf32>
    %32 = arith.addf %31, %30 : vector<8x1024xf32>
    %33 = tpu.reciprocal %32 {approx = true} : vector<8x1024xf32> -> vector<8x1024xf32>
    %34 = arith.mulf %32, %33 : vector<8x1024xf32>
    %cst_7 = arith.constant 2.000000e+00 : f32
    %35 = vector.broadcast %cst_7 : f32 to vector<8x1024xf32>
    %36 = arith.subf %35, %34 : vector<8x1024xf32>
    %37 = arith.mulf %33, %36 : vector<8x1024xf32>
    %cst_8 = arith.constant 1.000000e+00 : f32
    %38 = vector.broadcast %cst_8 : f32 to vector<8x1024xf32>
    %39 = arith.subf %38, %37 : vector<8x1024xf32>
    %cst_9 = arith.constant 1.000000e+00 : f32
    %40 = vector.broadcast %cst_9 : f32 to vector<8x1024xf32>
    %41 = arith.addf %27, %40 : vector<8x1024xf32>
    %42 = tpu.reciprocal %41 {approx = true} : vector<8x1024xf32> -> vector<8x1024xf32>
    %43 = arith.mulf %41, %42 : vector<8x1024xf32>
    %cst_10 = arith.constant 2.000000e+00 : f32
    %44 = vector.broadcast %cst_10 : f32 to vector<8x1024xf32>
    %45 = arith.subf %44, %43 : vector<8x1024xf32>
    %46 = arith.mulf %42, %45 : vector<8x1024xf32>
    %cst_11 = arith.constant 2.000000e+00 : f32
    %47 = vector.broadcast %cst_11 : f32 to vector<8x1024xf32>
    %48 = arith.mulf %47, %46 : vector<8x1024xf32>
    %cst_12 = arith.constant 1.000000e+00 : f32
    %49 = vector.broadcast %cst_12 : f32 to vector<8x1024xf32>
    %50 = arith.subf %49, %48 : vector<8x1024xf32>
    %51 = vector.broadcast %3 : f32 to vector<8x1024xf32>
    %52 = arith.mulf %51, %50 : vector<8x1024xf32>
    %53 = vector.broadcast %2 : f32 to vector<8x1024xf32>
    %54 = arith.addf %52, %53 : vector<8x1024xf32>
    %55 = arith.mulf %54, %50 : vector<8x1024xf32>
    %56 = vector.broadcast %1 : f32 to vector<8x1024xf32>
    %57 = arith.addf %55, %56 : vector<8x1024xf32>
    %58 = arith.mulf %57, %50 : vector<8x1024xf32>
    %59 = vector.broadcast %0 : f32 to vector<8x1024xf32>
    %60 = arith.addf %58, %59 : vector<8x1024xf32>
    %61 = arith.mulf %60, %50 : vector<8x1024xf32>
    %62 = vector.broadcast %23 : f32 to vector<8x1024xf32>
    %63 = arith.mulf %62, %50 : vector<8x1024xf32>
    %64 = vector.broadcast %22 : f32 to vector<8x1024xf32>
    %65 = arith.addf %63, %64 : vector<8x1024xf32>
    %66 = arith.mulf %65, %50 : vector<8x1024xf32>
    %67 = vector.broadcast %21 : f32 to vector<8x1024xf32>
    %68 = arith.addf %66, %67 : vector<8x1024xf32>
    %69 = arith.mulf %68, %50 : vector<8x1024xf32>
    %70 = vector.broadcast %20 : f32 to vector<8x1024xf32>
    %71 = arith.addf %69, %70 : vector<8x1024xf32>
    %72 = arith.mulf %71, %50 : vector<8x1024xf32>
    %73 = vector.broadcast %19 : f32 to vector<8x1024xf32>
    %74 = arith.addf %72, %73 : vector<8x1024xf32>
    %75 = vector.broadcast %18 : f32 to vector<8x1024xf32>
    %76 = arith.mulf %75, %50 : vector<8x1024xf32>
    %77 = vector.broadcast %17 : f32 to vector<8x1024xf32>
    %78 = arith.addf %76, %77 : vector<8x1024xf32>
    %79 = arith.mulf %78, %50 : vector<8x1024xf32>
    %80 = vector.broadcast %16 : f32 to vector<8x1024xf32>
    %81 = arith.addf %79, %80 : vector<8x1024xf32>
    %82 = arith.mulf %81, %50 : vector<8x1024xf32>
    %83 = vector.broadcast %15 : f32 to vector<8x1024xf32>
    %84 = arith.addf %82, %83 : vector<8x1024xf32>
    %85 = arith.mulf %84, %50 : vector<8x1024xf32>
    %86 = vector.broadcast %14 : f32 to vector<8x1024xf32>
    %87 = arith.addf %85, %86 : vector<8x1024xf32>
    %88 = arith.mulf %74, %39 : vector<8x1024xf32>
    %89 = arith.addf %88, %87 : vector<8x1024xf32>
    %90 = vector.broadcast %13 : f32 to vector<8x1024xf32>
    %91 = arith.mulf %90, %50 : vector<8x1024xf32>
    %92 = vector.broadcast %12 : f32 to vector<8x1024xf32>
    %93 = arith.addf %91, %92 : vector<8x1024xf32>
    %94 = arith.mulf %93, %50 : vector<8x1024xf32>
    %95 = vector.broadcast %11 : f32 to vector<8x1024xf32>
    %96 = arith.addf %94, %95 : vector<8x1024xf32>
    %97 = arith.mulf %96, %50 : vector<8x1024xf32>
    %98 = vector.broadcast %10 : f32 to vector<8x1024xf32>
    %99 = arith.addf %97, %98 : vector<8x1024xf32>
    %100 = arith.mulf %99, %50 : vector<8x1024xf32>
    %101 = vector.broadcast %9 : f32 to vector<8x1024xf32>
    %102 = arith.addf %100, %101 : vector<8x1024xf32>
    %103 = arith.mulf %89, %39 : vector<8x1024xf32>
    %104 = arith.addf %103, %102 : vector<8x1024xf32>
    %105 = vector.broadcast %8 : f32 to vector<8x1024xf32>
    %106 = arith.mulf %105, %50 : vector<8x1024xf32>
    %107 = vector.broadcast %7 : f32 to vector<8x1024xf32>
    %108 = arith.addf %106, %107 : vector<8x1024xf32>
    %109 = arith.mulf %108, %50 : vector<8x1024xf32>
    %110 = vector.broadcast %6 : f32 to vector<8x1024xf32>
    %111 = arith.addf %109, %110 : vector<8x1024xf32>
    %112 = arith.mulf %111, %50 : vector<8x1024xf32>
    %113 = vector.broadcast %5 : f32 to vector<8x1024xf32>
    %114 = arith.addf %112, %113 : vector<8x1024xf32>
    %115 = arith.mulf %114, %50 : vector<8x1024xf32>
    %116 = vector.broadcast %4 : f32 to vector<8x1024xf32>
    %117 = arith.addf %115, %116 : vector<8x1024xf32>
    %118 = arith.mulf %104, %39 : vector<8x1024xf32>
    %119 = arith.addf %118, %117 : vector<8x1024xf32>
    %120 = arith.mulf %119, %39 : vector<8x1024xf32>
    %121 = arith.addf %120, %61 : vector<8x1024xf32>
    %c0_13 = arith.constant 0 : index
    %c0_14 = arith.constant 0 : index
    %122 = vector.load %arg3[%c0_13, %c0_14] : memref<8x1024xf32, #tpu.memory_space<vmem>>, vector<8x1024xf32>
    tpu.vector_store %arg3[%c0_13, %c0_14], %121 {strides = array<i32>} : memref<8x1024xf32, #tpu.memory_space<vmem>>, vector<8x1024xf32>,
    return
  }
  func.func @transform_0(%arg0: i32) -> i32 {
    %c0_i32 = arith.constant 0 : i32
    %c0_i32_0 = arith.constant 0 : i32
    return %c0_i32 : i32
  }
  func.func @transform_1(%arg0: i32) -> (i32, i32, i32) {
    %c0_i32 = arith.constant 0 : i32
    %c0_i32_0 = arith.constant 0 : i32
    %c0_i32_1 = arith.constant 0 : i32
    return %c0_i32, %arg0, %c0_i32_0 : i32, i32, i32
  }
  func.func @transform_2(%arg0: i32) -> (i32, i32) {
    %c0_i32 = arith.constant 0 : i32
    %c0_i32_0 = arith.constant 0 : i32
    return %arg0, %c0_i32 : i32, i32
  }
}

</mosaic_0001>

<bundles_post_ra>
// kernel: tpu_custom_call.1
= control target key start
LH: loop header
LB: loop body
LE: loop exit
PB: predicated region body
PF: predicated region fallthrough
CT: control target
= control target key end

     0   :  { %7 = vsyncpa [#allocation5], 0  ;;  %s1400_s0 = inlined_call_operand.hbm [shape: f32[24], index: 0, kind: input, shape index: {}]   ;;  %s1401_s1 = inlined_call_operand.hbm [shape: f32[2,8,1024], index: 1, kind: input, shape index: {}]   ;;  %s1402_s2 = inlined_call_operand.hbm [shape: f32[8,1024], index: 2, kind: output, shape index: {}]  }
   0x1   :  { %8 = vsyncpa [#allocation3], 0 }
   0x2   :  { %9 = vsyncpa [#allocation4], 0  ;;  %s682_s11 = scalar_lea.hbm %s1400_s0, 16 }
   0x3   :  { %p683_p0 = scmp.ne.s32.totalorder %s1400_s0, %s682_s11  ;;  %p686_p1 = scmp.lt.u32.totalorder %s682_s11, %s1400_s0 }
   0x5   :  { %p688_p2 = pnand %p686_p1, %p683_p0 }
   0x7   :  { %691 = shalt.err (!%p688_p2)
}
   0x8   :  { %s742_s16 = smov [#allocation2]   ;;  %s743_s19 = smov [#allocation6]  }
   0x9   :  { %17 = dma.hbm_to_smem %s1400_s0, 16, %s742_s16, [#allocation5]  }
   0xa   :  { %s23_s20 = sshll.u32 %s743_s19, 4  ;;  %s692_s23 = scalar_lea.hbm %s1401_s1, 2048  ;;  %s24_s20 = int_to_ptr.vmem [resolvable:$true] %s23_s20 }
   0xb   :  { %p693_p3 = scmp.ne.s32.totalorder %s1401_s1, %s692_s23  ;;  %p696_p4 = scmp.lt.u32.totalorder %s692_s23, %s1401_s1 }
   0xd   :  { %p698_p5 = pnand %p696_p4, %p693_p3 }
   0xf   :  { %701 = shalt.err (!%p698_p5)
}
  0x10   :  { %s702_s28 = scalar_lea.vmem %s24_s20, 2048  ;;  %p707_p7 = scmp.lt.s32.totalorder %s24_s20, %s24_s20 }
  0x11   :  { %p703_p6 = scmp.ne.s32.totalorder %s24_s20, %s702_s28  ;;  %p708_p8 = scmp.lt.s32.totalorder %s702_s28, %s702_s28 }
  0x13   :  { %p709_p9 = por %p708_p8, %p707_p7 }
  0x15   :  { %p710_p10 = pnand %p709_p9, %p703_p6 }
  0x17   :  { %713 = shalt.err (!%p710_p10)
}
  0x18   :  { %s744_s0 = smov 1024   ;;  %s745_s29 = smov 64  }
  0x19   :  { %29 = dma.hbm_to_vmem [thread:$0]  %s1401_s1, 2048, %s24_s20, [#allocation3], %s744_s0, %s744_s0, %s745_s29  }
  0x1a   :  { %736 = dma.done.wait [#allocation5], 16  }
  0x1b   :  { %737 = vsyncadd [#allocation5], 4294967280 }
  0x1c   :  { %738 = dma.done.wait [#allocation3], 2048  }
  0x1d   :  { %739 = vsyncadd [#allocation3], 4294965248 }
  0x1e   :  { %36 = sfence }
  0x1f   :  { %s786_s4 = sld [smem:[#allocation2]]  ;;  %s788_s5 = sld [smem:[#allocation2 + $0x1]]  ;;  %v61_v0 = vld [vmem:[#allocation6] sm:$0xff]  ;;  %v62_v4 = vld [vmem:[#allocation6 + $0x8] sm:$0xff]  ;;  %v63_v7 = vld [vmem:[#allocation6 + $0x10] sm:$0xff] }
  0x20   :  { %v70_v1 = vld [vmem:[#allocation6 + $0x40] sm:$0xff]  ;;  %s790_s6 = sld [smem:[#allocation2 + $0x2]]  ;;  %s792_s7 = sld [smem:[#allocation2 + $0x3]]  ;;  %v78_v2 = vmul.f32 0.273, %v61_v0  ;;  %v71_v6 = vld [vmem:[#allocation6 + $0x48] sm:$0xff] }
  0x21   :  { %s794_s8 = sld [smem:[#allocation2 + $0x4]]  ;;  %s796_s9 = sld [smem:[#allocation2 + $0x5]]  ;;  %v142_v3 = vadd.f32 1.0, %v70_v1  ;;  %v79_v8 = vmul.f32 0.273, %v62_v4  ;;  %v812_v10 = vadd.f32 1.0, %v71_v6 }
  0x22   :  { %s798_s1 = sld [smem:[#allocation2 + $0x6]]  ;;  %s800_s10 = sld [smem:[#allocation2 + $0x7]]  ;;  %v86_v5 = vmul.f32 %v78_v2, %v61_v0  ;;  %v72_v12 = vld [vmem:[#allocation6 + $0x50] sm:$0xff]  ;;  %v80_v13 = vmul.f32 0.273, %v63_v7  ;;  %v64_v14 = vld [vmem:[#allocation6 + $0x18] sm:$0xff] }
  0x23   :  { %s802_s11 = sld [smem:[#allocation2 + $0x8]]  ;;  %s804_s12 = sld [smem:[#allocation2 + $0x9]]  ;;  %650 = vrcp.f32 %v142_v3  ;;  %v87_v11 = vmul.f32 %v79_v8, %v62_v4  ;;  %v830_v17 = vadd.f32 1.0, %v72_v12  ;;  %v73_v20 = vld [vmem:[#allocation6 + $0x58] sm:$0xff]  ;;  %v81_v21 = vmul.f32 0.273, %v64_v14 }
  0x24   :  { %s806_s13 = sld [smem:[#allocation2 + $0xa]]  ;;  %s808_s14 = sld [smem:[#allocation2 + $0xb]]  ;;  %v810_v9 = vadd.f32 1.0, %v86_v5  ;;  %v88_v16 = vmul.f32 %v80_v13, %v63_v7  ;;  %v65_v22 = vld [vmem:[#allocation6 + $0x20] sm:$0xff]  ;;  %v871_v32 = vadd.f32 1.0, %v73_v20  ;;  %v66_v44 = vld [vmem:[#allocation6 + $0x28] sm:$0xff] }
  0x25   :  { %s814_s15 = sld [smem:[#allocation2 + $0xc]]  ;;  %s816_s16 = sld [smem:[#allocation2 + $0xd]]  ;;  %v825_v15 = vadd.f32 1.0, %v87_v11  ;;  %v835_v18 = vstv %s788_s5  ;;  %v838_v19 = vstv %s786_s4  ;;  %v89_v29 = vmul.f32 %v81_v21, %v64_v14  ;;  %v74_v39 = vld [vmem:[#allocation6 + $0x60] sm:$0xff]  ;;  %v75_v48 = vld [vmem:[#allocation6 + $0x68] sm:$0xff]  ;;  %v67_v53 = vld [vmem:[#allocation6 + $0x30] sm:$0xff] }
  0x26   :  { %s818_s17 = sld [smem:[#allocation2 + $0xf]]  ;;  %652 = vrcp.f32 %v810_v9  ;;  %s821_s18 = sld [smem:[#allocation2 + $0xe]]  ;;  %v844_v23 = vstv %s792_s7  ;;  %v847_v24 = vstv %s790_s6  ;;  %v861_v28 = vadd.f32 1.0, %v88_v16  ;;  %v76_v63 = vld [vmem:[#allocation6 + $0x70] sm:$0xff] }
  0x27   :  { %s823_s19 = sld [smem:[#allocation2 + $0x11]]  ;;  %654 = vrcp.f32 %v812_v10  ;;  %s828_s20 = sld [smem:[#allocation2 + $0x10]]  ;;  %v850_v25 = vstv %s796_s9  ;;  %v859_v27 = vstv %s794_s8  ;;  %v82_v33 = vmul.f32 0.273, %v65_v22 }
  0x28   :  { %s832_s21 = sld [smem:[#allocation2 + $0x13]]  ;;  %656 = vrcp.f32 %v825_v15  ;;  %s841_s22 = sld [smem:[#allocation2 + $0x12]]  ;;  %v856_v26 = vstv %s800_s10  ;;  %v869_v31 = vstv %s798_s1  ;;  %v902_v47 = vadd.f32 1.0, %v89_v29 }
  0x29   :  { %658 = vrcp.f32 %v830_v17  ;;  %s853_s23 = sld [smem:[#allocation2 + $0x15]]  ;;  %s863_s24 = sld [smem:[#allocation2 + $0x14]]  ;;  %v866_v30 = vstv %s804_s12  ;;  %v885_v38 = vstv %s802_s11  ;;  %v90_v43 = vmul.f32 %v82_v33, %v65_v22 }
  0x2a   :  { %s873_s25 = sld [smem:[#allocation2 + $0x17]]  ;;  %v879_v36 = vstv %s808_s14  ;;  %v882_v37 = vstv %s806_s13  ;;  %s887_s26 = sld [smem:[#allocation2 + $0x16]]  ;;  %660 = vrcp.f32 %v861_v28  ;;  %v908_v52 = vadd.f32 1.0, %v74_v39 }
  0x2b   :  { %v876_v35 = vstv %s816_s16  ;;  %v893_v42 = vstv %s814_s15  ;;  %662 = vrcp.f32 %v871_v32  ;;  %v914_v57 = vadd.f32 1.0, %v90_v43  ;;  %s746_s27 = smov [#allocation7]  }
  0x2c   :  { %v890_v41 = vstv %s818_s17  ;;  %v899_v46 = vstv %s821_s18  ;;  %v83_v58 = vmul.f32 0.273, %v66_v44  ;;  %v920_v62 = vadd.f32 1.0, %v75_v48  ;;  %s612_s28 = sshll.u32 %s746_s27, 4  ;;  %s613_s28 = int_to_ptr.vmem [resolvable:$true] %s612_s28 }
  0x2d   :  { %v651_v34 = vpop.eup %650  ;;  %v896_v45 = vstv %s823_s19  ;;  %v905_v51 = vstv %s828_s20  ;;  %664 = vrcp.f32 %v902_v47  ;;  %s714_s0 = scalar_lea.vmem %s613_s28, 1024  ;;  %p719_p12 = scmp.lt.s32.totalorder %s613_s28, %s613_s28 }
  0x2e   :  { %v158_v40 = vmul.f32 %v651_v34, %v142_v3  ;;  %v912_v56 = vstv %s832_s21  ;;  %v917_v60 = vstv %s841_s22  ;;  %v84_v3 = vmul.f32 0.273, %v67_v53  ;;  %p715_p11 = scmp.ne.s32.totalorder %s613_s28, %s714_s0  ;;  %p720_p13 = scmp.lt.s32.totalorder %s714_s0, %s714_s0 }
  0x2f   :  { %v925_v2 = vstv %s853_s23  ;;  %v931_v6 = vstv %s863_s24  ;;  %666 = vrcp.f32 %v908_v52 }
  0x30   :  { %v653_v49 = vpop.eup %652  ;;  %v166_v50 = vsub.f32 2.0, %v158_v40  ;;  %v935_v8 = vstv %s873_s25  ;;  %668 = vrcp.f32 %v914_v57  ;;  %v943_v12 = vstv %s887_s26  ;;  %p721_p0 = por %p720_p13, %p719_p12 }
  0x31   :  { %v655_v54 = vpop.eup %654  ;;  %v110_v55 = vmul.f32 %v653_v49, %v810_v9  ;;  %v91_v9 = vmul.f32 %v83_v58, %v66_v44  ;;  %670 = vrcp.f32 %v920_v62  ;;  %v92_v21 = vmul.f32 %v84_v3, %v67_v53 }
  0x32   :  { %v174_v59 = vmul.f32 %v651_v34, %v166_v50  ;;  %v159_v61 = vmul.f32 %v655_v54, %v812_v10  ;;  %v922_v0 = vpop.eup %656  ;;  %v938_v10 = vadd.f32 1.0, %v76_v63  ;;  %p722_p1 = pnand %p721_p0, %p715_p11 }
  0x33   :  { %v118_v1 = vsub.f32 2.0, %v110_v55  ;;  %v928_v4 = vpop.eup %658  ;;  %v111_v16 = vmul.f32 %v922_v0, %v825_v15  ;;  %v964_v40 = vadd.f32 1.0, %v91_v9  ;;  %v976_v58 = vadd.f32 1.0, %v92_v21 }
  0x34   :  { %v182_v5 = vmul.f32 2.0, %v174_v59  ;;  %v167_v7 = vsub.f32 2.0, %v159_v61  ;;  %1406 = vst [vmem:[#allocation11_spill] sm:$0xff] %v938_v10  ;;  %v950_v20 = vmul.f32 %v928_v4, %v830_v17  ;;  %v960_v39 = vpop.eup %660  ;;  %672 = vrcp.f32 %v938_v10 }
  0x35   :  { %v126_v14 = vmul.f32 %v653_v49, %v118_v1  ;;  %v967_v43 = vpop.eup %662  ;;  %1407 = vst [vmem:[#allocation12_spill] sm:$0xff] %v976_v58  ;;  %674 = vrcp.f32 %v964_v40 }
  0x36   :  { %v940_v11 = vsub.f32 1.0, %v182_v5  ;;  %v175_v13 = vmul.f32 %v655_v54, %v167_v7  ;;  %v119_v54 = vsub.f32 2.0, %v111_v16 }
  0x37   :  { %v982_v3 = vpop.eup %664  ;;  %v993_v21 = vsub.f32 1.0, %v126_v14 }
  0x38   :  { %v199_v22 = vmul.f32 %v844_v23, %v940_v11  ;;  %v259_v29 = vmul.f32 %v935_v8, %v940_v11  ;;  %v328_v33 = vmul.f32 %v917_v60, %v940_v11  ;;  %v413_v34 = vmul.f32 %v876_v35, %v940_v11 }
  0x39   :  { %v498_v15 = vmul.f32 %v885_v38, %v940_v11  ;;  %v183_v17 = vmul.f32 2.0, %v175_v13  ;;  %v991_v16 = vpop.eup %666 }
  0x3a   :  { %v208_v44 = vadd.f32 %v847_v24, %v199_v22  ;;  %v268_v48 = vadd.f32 %v943_v12, %v259_v29  ;;  %v337_v49 = vadd.f32 %v896_v45, %v328_v33  ;;  %v422_v50 = vadd.f32 %v893_v42, %v413_v34  ;;  %v998_v34 = vpop.eup %668 }
  0x3b   :  { %v507_v53 = vadd.f32 %v856_v26, %v498_v15  ;;  %v974_v55 = vsub.f32 1.0, %v183_v17 }
  0x3c   :  { %v216_v59 = vmul.f32 %v208_v44, %v940_v11  ;;  %v276_v61 = vmul.f32 %v268_v48, %v940_v11  ;;  %v345_v63 = vmul.f32 %v337_v49, %v940_v11  ;;  %v430_v1 = vmul.f32 %v422_v50, %v940_v11  ;;  %v1004_v49 = vpop.eup %670 }
  0x3d   :  { %v515_v5 = vmul.f32 %v507_v53, %v940_v11  ;;  %v200_v7 = vmul.f32 %v844_v23, %v974_v55  ;;  %v260_v9 = vmul.f32 %v935_v8, %v974_v55  ;;  %v329_v13 = vmul.f32 %v917_v60, %v974_v55 }
  0x3e   :  { %v285_v22 = vadd.f32 %v925_v2, %v276_v61  ;;  %v354_v29 = vadd.f32 %v905_v51, %v345_v63  ;;  %v439_v33 = vadd.f32 %v879_v36, %v430_v1  ;;  %v225_v15 = vadd.f32 %v835_v18, %v216_v59 }
  0x3f   :  { %v524_v17 = vadd.f32 %v869_v31, %v515_v5  ;;  %v269_v44 = vadd.f32 %v943_v12, %v260_v9  ;;  %v338_v48 = vadd.f32 %v896_v45, %v329_v13  ;;  %v209_v61 = vadd.f32 %v847_v24, %v200_v7 }
  0x40   :  { %v293_v14 = vmul.f32 %v285_v22, %v940_v11  ;;  %v362_v50 = vmul.f32 %v354_v29, %v940_v11  ;;  %v447_v53 = vmul.f32 %v439_v33, %v940_v11  ;;  %v112_v5 = vmul.f32 %v960_v39, %v861_v28  ;;  %v1019_v33 = vpop.eup %672 }
  0x41   :  { %v532_v63 = vmul.f32 %v524_v17, %v940_v11  ;;  %v277_v59 = vmul.f32 %v269_v44, %v974_v55  ;;  %v346_v1 = vmul.f32 %v338_v48, %v974_v55  ;;  %v168_v29 = vsub.f32 2.0, %v950_v20  ;;  %1408 = vst [vmem:[#allocation13_spill] sm:$0xff] %v1019_v33 }
  0x42   :  { %v302_v9 = vadd.f32 %v931_v6, %v293_v14  ;;  %v371_v13 = vadd.f32 %v890_v41, %v362_v50  ;;  %v456_v22 = vadd.f32 %v882_v37, %v447_v53  ;;  %v233_v7 = vmul.f32 %v225_v15, %v940_v11 }
  0x43   :  { %v127_v17 = vmul.f32 %v922_v0, %v119_v54  ;;  %v286_v44 = vadd.f32 %v925_v2, %v277_v59  ;;  %v355_v48 = vadd.f32 %v905_v51, %v346_v1  ;;  %v217_v50 = vmul.f32 %v209_v61, %v974_v55 }
  0x44   :  { %v310_v28 = vmul.f32 %v302_v9, %v940_v11  ;;  %v379_v14 = vmul.f32 %v371_v13, %v940_v11  ;;  %v541_v20 = vadd.f32 %v850_v25, %v532_v63  ;;  %v120_v58 = vsub.f32 2.0, %v112_v5 }
  0x45   :  { %v294_v53 = vmul.f32 %v286_v44, %v974_v55  ;;  %v363_v15 = vmul.f32 %v355_v48, %v974_v55  ;;  %v464_v59 = vmul.f32 %v456_v22, %v940_v11  ;;  %v414_v1 = vmul.f32 %v876_v35, %v974_v55 }
  0x46   :  { %v319_v0 = vadd.f32 %v912_v56, %v310_v28  ;;  %v388_v54 = vadd.f32 %v899_v46, %v379_v14  ;;  %v242_v61 = vadd.f32 %v838_v19, %v233_v7  ;;  %v1038_v9 = vsub.f32 1.0, %v127_v17 }
  0x47   :  { %v303_v63 = vadd.f32 %v931_v6, %v294_v53  ;;  %v372_v13 = vadd.f32 %v890_v41, %v363_v15  ;;  %v226_v5 = vadd.f32 %v835_v18, %v217_v50  ;;  %v423_v48 = vadd.f32 %v893_v42, %v414_v1 }
  0x48   :  { %v396_v44 = vmul.f32 %v319_v0, %v993_v21  ;;  %v499_v22 = vmul.f32 %v885_v38, %v974_v55  ;;  %v549_v28 = vmul.f32 %v541_v20, %v940_v11  ;;  %v176_v17 = vmul.f32 %v928_v4, %v168_v29 }
  0x49   :  { %v311_v14 = vmul.f32 %v303_v63, %v974_v55  ;;  %v380_v7 = vmul.f32 %v372_v13, %v974_v55  ;;  %v473_v15 = vadd.f32 %v866_v30, %v464_v59  ;;  %v431_v0 = vmul.f32 %v423_v48, %v974_v55 }
  0x4a   :  { %v404_v53 = vadd.f32 %v396_v44, %v388_v54  ;;  %v508_v50 = vadd.f32 %v856_v26, %v499_v22  ;;  %v128_v10 = vmul.f32 %v960_v39, %v120_v58  ;;  %v184_v20 = vmul.f32 2.0, %v176_v17  ;;  %v1067_v22 = vpop.eup %674 }
  0x4b   :  { %v320_v1 = vadd.f32 %v912_v56, %v311_v14  ;;  %v389_v33 = vadd.f32 %v899_v46, %v380_v7  ;;  %v250_v63 = vmul.f32 %v242_v61, %v940_v11  ;;  %v440_v4 = vadd.f32 %v879_v36, %v431_v0 }
  0x4c   :  { %v481_v13 = vmul.f32 %v404_v53, %v993_v21  ;;  %v516_v29 = vmul.f32 %v508_v50, %v974_v55  ;;  %v234_v54 = vmul.f32 %v226_v5, %v974_v55  ;;  %v1063_v44 = vsub.f32 1.0, %v184_v20 }
  0x4d   :  { %v397_v59 = vmul.f32 %v320_v1, %v1038_v9  ;;  %v161_v48 = vmul.f32 %v967_v43, %v871_v32  ;;  %v558_v11 = vadd.f32 %v859_v27, %v549_v28  ;;  %v448_v58 = vmul.f32 %v440_v4, %v974_v55 }
  0x4e   :  { %v489_v39 = vadd.f32 %v481_v13, %v473_v15  ;;  %v525_v61 = vadd.f32 %v869_v31, %v516_v29  ;;  %v201_v5 = vmul.f32 %v844_v23, %v1063_v44  ;;  %v261_v7 = vmul.f32 %v935_v8, %v1063_v44 }
  0x4f   :  { %v405_v14 = vadd.f32 %v397_v59, %v389_v33  ;;  %v330_v17 = vmul.f32 %v917_v60, %v1063_v44  ;;  %v457_v53 = vadd.f32 %v882_v37, %v448_v58  ;;  %v415_v15 = vmul.f32 %v876_v35, %v1063_v44 }
  0x50   :  { %v566_v32 = vmul.f32 %v489_v39, %v993_v21  ;;  %v533_v28 = vmul.f32 %v525_v61, %v974_v55  ;;  %v270_v0 = vadd.f32 %v943_v12, %v261_v7  ;;  %v169_v1 = vsub.f32 2.0, %v161_v48 }
  0x51   :  { %v482_v33 = vmul.f32 %v405_v14, %v1038_v9  ;;  %v339_v50 = vadd.f32 %v896_v45, %v330_v17  ;;  %v465_v13 = vmul.f32 %v457_v53, %v974_v55  ;;  %v424_v29 = vadd.f32 %v893_v42, %v415_v15 }
  0x52   :  { %v574_v20 = vadd.f32 %v566_v32, %v558_v11  ;;  %v542_v4 = vadd.f32 %v850_v25, %v533_v28  ;;  %v210_v59 = vadd.f32 %v847_v24, %v201_v5  ;;  %v278_v39 = vmul.f32 %v270_v0, %v1063_v44 }
  0x53   :  { %v347_v58 = vmul.f32 %v339_v50, %v1063_v44  ;;  %v500_v61 = vmul.f32 %v885_v38, %v1063_v44  ;;  %v474_v48 = vadd.f32 %v866_v30, %v465_v13  ;;  %v432_v7 = vmul.f32 %v424_v29, %v1063_v44 }
  0x54   :  { %v582_v14 = vmul.f32 %v574_v20, %v993_v21  ;;  %v550_v11 = vmul.f32 %v542_v4, %v974_v55  ;;  %v243_v17 = vadd.f32 %v838_v19, %v234_v54  ;;  %v287_v32 = vadd.f32 %v925_v2, %v278_v39 }
  0x55   :  { %v356_v5 = vadd.f32 %v905_v51, %v347_v58  ;;  %v509_v53 = vadd.f32 %v856_v26, %v500_v61  ;;  %v490_v15 = vadd.f32 %v482_v33, %v474_v48  ;;  %v441_v21 = vadd.f32 %v879_v36, %v432_v7 }
  0x56   :  { %v590_v28 = vadd.f32 %v582_v14, %v250_v63  ;;  %v559_v0 = vadd.f32 %v859_v27, %v550_v11  ;;  %v295_v50 = vmul.f32 %v287_v32, %v1063_v44  ;;  %v113_v54 = vmul.f32 %v982_v3, %v902_v47 }
  0x57   :  { %v364_v20 = vmul.f32 %v356_v5, %v1063_v44  ;;  %v517_v13 = vmul.f32 %v509_v53, %v1063_v44  ;;  %v567_v4 = vmul.f32 %v490_v15, %v1038_v9  ;;  %v218_v29 = vmul.f32 %v210_v59, %v1063_v44 }
  0x58   :  { %598 = vst [vmem:[#allocation7] sm:$0xff] %v590_v28  ;;  %v449_v63 = vmul.f32 %v441_v21, %v1063_v44  ;;  %v177_v33 = vmul.f32 %v967_v43, %v169_v1  ;;  %v1113_v39 = vsub.f32 1.0, %v128_v10  ;;  %v304_v58 = vadd.f32 %v931_v6, %v295_v50 }
  0x59   :  { %v373_v61 = vadd.f32 %v890_v41, %v364_v20  ;;  %v526_v14 = vadd.f32 %v869_v31, %v517_v13  ;;  %v251_v48 = vmul.f32 %v243_v17, %v974_v55  ;;  %v575_v47 = vadd.f32 %v567_v4, %v559_v0 }
  0x5a   :  { %v458_v11 = vadd.f32 %v882_v37, %v449_v63  ;;  %v185_v7 = vmul.f32 2.0, %v177_v33  ;;  %v312_v59 = vmul.f32 %v304_v58, %v1063_v44  ;;  %v121_v10 = vsub.f32 2.0, %v113_v54 }
  0x5b   :  { %v381_v32 = vmul.f32 %v373_v61, %v1063_v44  ;;  %v534_v43 = vmul.f32 %v526_v14, %v1063_v44  ;;  %v583_v1 = vmul.f32 %v575_v47, %v1038_v9  ;;  %v227_v5 = vadd.f32 %v835_v18, %v218_v29 }
  0x5c   :  { %v466_v53 = vmul.f32 %v458_v11, %v1063_v44  ;;  %v1126_v28 = vsub.f32 1.0, %v185_v7  ;;  %v321_v55 = vadd.f32 %v912_v56, %v312_v59  ;;  %v114_v0 = vmul.f32 %v998_v34, %v914_v57 }
  0x5d   :  { %v390_v17 = vadd.f32 %v899_v46, %v381_v32  ;;  %v543_v15 = vadd.f32 %v850_v25, %v534_v43  ;;  %v591_v21 = vadd.f32 %v583_v1, %v251_v48  ;;  %v162_v20 = vmul.f32 %v991_v16, %v908_v52 }
  0x5e   :  { %v202_v50 = vmul.f32 %v844_v23, %v1126_v28  ;;  %v262_v9 = vmul.f32 %v935_v8, %v1126_v28  ;;  %v398_v13 = vmul.f32 %v321_v55, %v1113_v39  ;;  %v129_v54 = vmul.f32 %v982_v3, %v121_v10 }
  0x5f   :  { %v331_v4 = vmul.f32 %v917_v60, %v1126_v28  ;;  %v416_v57 = vmul.f32 %v876_v35, %v1126_v28  ;;  %599 = vst [vmem:[#allocation7 + $0x8] sm:$0xff] %v591_v21  ;;  %v235_v29 = vmul.f32 %v227_v5, %v1063_v44  ;;  %v475_v63 = vadd.f32 %v866_v30, %v466_v53 }
  0x60   :  { %v271_v33 = vadd.f32 %v943_v12, %v262_v9  ;;  %v501_v52 = vmul.f32 %v885_v38, %v1126_v28  ;;  %v406_v58 = vadd.f32 %v398_v13, %v390_v17  ;;  %v551_v61 = vmul.f32 %v543_v15, %v1063_v44 }
  0x61   :  { %v340_v3 = vadd.f32 %v896_v45, %v331_v4  ;;  %v425_v14 = vadd.f32 %v893_v42, %v416_v57  ;;  %v211_v48 = vadd.f32 %v847_v24, %v202_v50  ;;  %v170_v7 = vsub.f32 2.0, %v162_v20 }
  0x62   :  { %v279_v47 = vmul.f32 %v271_v33, %v1126_v28  ;;  %v510_v11 = vadd.f32 %v856_v26, %v501_v52  ;;  %v483_v59 = vmul.f32 %v406_v58, %v1113_v39  ;;  %v122_v10 = vsub.f32 2.0, %v114_v0 }
  0x63   :  { %v348_v32 = vmul.f32 %v340_v3, %v1126_v28  ;;  %v433_v43 = vmul.f32 %v425_v14, %v1126_v28  ;;  %v244_v1 = vadd.f32 %v838_v19, %v235_v29  ;;  %v178_v55 = vmul.f32 %v991_v16, %v170_v7 }
  0x64   :  { %v288_v5 = vadd.f32 %v925_v2, %v279_v47  ;;  %v518_v53 = vmul.f32 %v510_v11, %v1126_v28  ;;  %v491_v17 = vadd.f32 %v483_v59, %v475_v63  ;;  %v560_v15 = vadd.f32 %v859_v27, %v551_v61 }
  0x65   :  { %v357_v21 = vadd.f32 %v905_v51, %v348_v32  ;;  %v442_v50 = vadd.f32 %v879_v36, %v433_v43  ;;  %v219_v9 = vmul.f32 %v211_v48, %v1126_v28  ;;  %v186_v13 = vmul.f32 2.0, %v178_v55 }
  0x66   :  { %v296_v20 = vmul.f32 %v288_v5, %v1126_v28  ;;  %v527_v0 = vadd.f32 %v869_v31, %v518_v53  ;;  %v568_v4 = vmul.f32 %v491_v17, %v1113_v39  ;;  %v130_v29 = vmul.f32 %v998_v34, %v122_v10 }
  0x67   :  { %v365_v57 = vmul.f32 %v357_v21, %v1126_v28  ;;  %v450_v16 = vmul.f32 %v442_v50, %v1126_v28  ;;  %v252_v63 = vmul.f32 %v244_v1, %v1063_v44  ;;  %v1176_v58 = vsub.f32 1.0, %v186_v13 }
  0x68   :  { %v305_v33 = vadd.f32 %v931_v6, %v296_v20  ;;  %v535_v52 = vmul.f32 %v527_v0, %v1126_v28  ;;  %v576_v61 = vadd.f32 %v568_v4, %v560_v15  ;;  %v1182_v48 = vmul.f32 %v1067_v22, %v964_v40 }
  0x69   :  { %v374_v3 = vadd.f32 %v890_v41, %v365_v57  ;;  %v459_v14 = vadd.f32 %v882_v37, %v450_v16  ;;  %v1184_v47 = vsub.f32 1.0, %v129_v54  ;;  %v228_v34 = vadd.f32 %v835_v18, %v219_v9 }
  0x6a   :  { %v313_v44 = vmul.f32 %v305_v33, %v1126_v28  ;;  %v203_v11 = vmul.f32 %v844_v23, %v1176_v58  ;;  %v584_v7 = vmul.f32 %v576_v61, %v1113_v39  ;;  %v1192_v32 = vsub.f32 1.0, %v130_v29 }
  0x6b   :  { %v382_v59 = vmul.f32 %v374_v3, %v1126_v28  ;;  %v263_v43 = vmul.f32 %v935_v8, %v1176_v58  ;;  %v467_v54 = vmul.f32 %v459_v14, %v1126_v28  ;;  %v544_v10 = vadd.f32 %v850_v25, %v535_v52 }
  0x6c   :  { %v322_v40 = vadd.f32 %v912_v56, %v313_v44  ;;  %v332_v1 = vmul.f32 %v917_v60, %v1176_v58  ;;  %v592_v5 = vadd.f32 %v584_v7, %v252_v63  ;;  %v123_v55 = vsub.f32 2.0, %v1182_v48  ;;  %v1410_v44 = vld [vmem:[#allocation13_spill] sm:$0xff] }
  0x6d   :  { %v391_v53 = vadd.f32 %v899_v46, %v382_v59  ;;  %v272_v39 = vadd.f32 %v943_v12, %v263_v43  ;;  %v236_v17 = vmul.f32 %v228_v34, %v1126_v28  ;;  %v212_v21 = vadd.f32 %v847_v24, %v203_v11  ;;  %v1409_v34 = vld [vmem:[#allocation11_spill] sm:$0xff] }
  0x6e   :  { %v399_v15 = vmul.f32 %v322_v40, %v1184_v47  ;;  %v341_v50 = vadd.f32 %v896_v45, %v332_v1  ;;  %600 = vst [vmem:[#allocation7 + $0x10] sm:$0xff] %v592_v5  ;;  %v417_v20 = vmul.f32 %v876_v35, %v1176_v58  ;;  %v502_v0 = vmul.f32 %v885_v38, %v1176_v58 }
  0x6f   :  { %v280_v9 = vmul.f32 %v272_v39, %v1176_v58  ;;  %v163_v13 = vmul.f32 %v1004_v49, %v920_v62  ;;  %v476_v57 = vadd.f32 %v866_v30, %v467_v54  ;;  %v552_v16 = vmul.f32 %v544_v10, %v1126_v28 }
  0x70   :  { %v407_v4 = vadd.f32 %v399_v15, %v391_v53  ;;  %v349_v29 = vmul.f32 %v341_v50, %v1176_v58  ;;  %v426_v33 = vadd.f32 %v893_v42, %v417_v20  ;;  %v511_v52 = vadd.f32 %v856_v26, %v502_v0 }
  0x71   :  { %v289_v63 = vadd.f32 %v925_v2, %v280_v9  ;;  %v171_v61 = vsub.f32 2.0, %v163_v13  ;;  %v220_v14 = vmul.f32 %v212_v21, %v1176_v58  ;;  %v164_v11 = vmul.f32 %v1410_v44, %v1409_v34 }
  0x72   :  { %v484_v3 = vmul.f32 %v407_v4, %v1184_v47  ;;  %v358_v62 = vadd.f32 %v905_v51, %v349_v29  ;;  %v434_v59 = vmul.f32 %v426_v33, %v1176_v58  ;;  %v519_v43 = vmul.f32 %v511_v52, %v1176_v58 }
  0x73   :  { %v297_v7 = vmul.f32 %v289_v63, %v1176_v58  ;;  %v179_v40 = vmul.f32 %v1004_v49, %v171_v61  ;;  %v245_v54 = vadd.f32 %v838_v19, %v236_v17  ;;  %v561_v1 = vadd.f32 %v859_v27, %v552_v16  ;;  %v1411_v63 = vld [vmem:[#allocation12_spill] sm:$0xff] }
  0x74   :  { %v492_v10 = vadd.f32 %v484_v3, %v476_v57  ;;  %v366_v5 = vmul.f32 %v358_v62, %v1176_v58  ;;  %v443_v39 = vadd.f32 %v879_v36, %v434_v59  ;;  %v528_v15 = vadd.f32 %v869_v31, %v519_v43 }
  0x75   :  { %v306_v53 = vadd.f32 %v931_v6, %v297_v7  ;;  %v187_v21 = vmul.f32 2.0, %v179_v40  ;;  %v229_v9 = vadd.f32 %v835_v18, %v220_v14  ;;  %v172_v20 = vsub.f32 2.0, %v164_v11 }
  0x76   :  { %v569_v50 = vmul.f32 %v492_v10, %v1184_v47  ;;  %v375_v49 = vadd.f32 %v890_v41, %v366_v5  ;;  %v451_v0 = vmul.f32 %v443_v39, %v1176_v58  ;;  %v536_v13 = vmul.f32 %v528_v15, %v1176_v58 }
  0x77   :  { %v314_v17 = vmul.f32 %v306_v53, %v1176_v58  ;;  %v1242_v4 = vsub.f32 1.0, %v187_v21  ;;  %v253_v57 = vmul.f32 %v245_v54, %v1126_v28  ;;  %676 = vrcp.f32 %v1411_v63 }
  0x78   :  { %v577_v16 = vadd.f32 %v569_v50, %v561_v1  ;;  %v383_v29 = vmul.f32 %v375_v49, %v1176_v58  ;;  %v460_v52 = vadd.f32 %v882_v37, %v451_v0  ;;  %v545_v61 = vadd.f32 %v850_v25, %v536_v13 }
  0x79   :  { %v323_v33 = vadd.f32 %v912_v56, %v314_v17  ;;  %v204_v3 = vmul.f32 %v844_v23, %v1242_v4  ;;  %v264_v28 = vmul.f32 %v935_v8, %v1242_v4  ;;  %v333_v34 = vmul.f32 %v917_v60, %v1242_v4 }
  0x7a   :  { %v585_v14 = vmul.f32 %v577_v16, %v1184_v47  ;;  %v392_v62 = vadd.f32 %v899_v46, %v383_v29  ;;  %v237_v11 = vmul.f32 %v229_v9, %v1176_v58  ;;  %v468_v59 = vmul.f32 %v460_v52, %v1176_v58 }
  0x7b   :  { %v400_v7 = vmul.f32 %v323_v33, %v1192_v32  ;;  %v180_v43 = vmul.f32 %v1410_v44, %v172_v20  ;;  %v273_v54 = vadd.f32 %v943_v12, %v264_v28  ;;  %v342_v47 = vadd.f32 %v896_v45, %v333_v34 }
  0x7c   :  { %v593_v40 = vadd.f32 %v585_v14, %v253_v57  ;;  %v418_v10 = vmul.f32 %v876_v35, %v1242_v4  ;;  %v477_v5 = vadd.f32 %v866_v30, %v468_v59  ;;  %v553_v53 = vmul.f32 %v545_v61, %v1176_v58 }
  0x7d   :  { %v408_v1 = vadd.f32 %v400_v7, %v392_v62  ;;  %v213_v39 = vadd.f32 %v847_v24, %v204_v3  ;;  %v281_v15 = vmul.f32 %v273_v54, %v1242_v4  ;;  %v350_v44 = vmul.f32 %v342_v47, %v1242_v4 }
  0x7e   :  { %601 = vst [vmem:[#allocation7 + $0x18] sm:$0xff] %v593_v40  ;;  %v427_v21 = vadd.f32 %v893_v42, %v418_v10  ;;  %v503_v50 = vmul.f32 %v885_v38, %v1242_v4  ;;  %v131_v49 = vmul.f32 %v1067_v22, %v123_v55  ;;  %v188_v20 = vmul.f32 2.0, %v180_v43 }
  0x7f   :  { %v485_v9 = vmul.f32 %v408_v1, %v1192_v32  ;;  %v290_v17 = vadd.f32 %v925_v2, %v281_v15  ;;  %v359_v0 = vadd.f32 %v905_v51, %v350_v44  ;;  %v246_v16 = vadd.f32 %v838_v19, %v237_v11 }
  0x80   :  { %v435_v13 = vmul.f32 %v427_v21, %v1242_v4  ;;  %v512_v57 = vadd.f32 %v856_v26, %v503_v50  ;;  %v562_v33 = vadd.f32 %v859_v27, %v553_v53  ;;  %v221_v52 = vmul.f32 %v213_v39, %v1242_v4 }
  0x81   :  { %v493_v29 = vadd.f32 %v485_v9, %v477_v5  ;;  %v677_v61 = vpop.eup %676  ;;  %v298_v48 = vmul.f32 %v290_v17, %v1242_v4  ;;  %v367_v22 = vmul.f32 %v359_v0, %v1242_v4  ;;  %v1290_v62 = vsub.f32 1.0, %v131_v49 }
  0x82   :  { %v444_v55 = vadd.f32 %v879_v36, %v435_v13  ;;  %v520_v3 = vmul.f32 %v512_v57, %v1242_v4  ;;  %v1292_v28 = vsub.f32 1.0, %v188_v20  ;;  %v254_v43 = vmul.f32 %v246_v16, %v1176_v58 }
  0x83   :  { %v570_v14 = vmul.f32 %v493_v29, %v1192_v32  ;;  %v307_v34 = vadd.f32 %v931_v6, %v298_v48  ;;  %v376_v11 = vadd.f32 %v890_v41, %v367_v22  ;;  %v230_v54 = vadd.f32 %v835_v18, %v221_v52 }
  0x84   :  { %v452_v7 = vmul.f32 %v444_v55, %v1242_v4  ;;  %v529_v59 = vadd.f32 %v869_v31, %v520_v3  ;;  %v116_v47 = vmul.f32 %v677_v61, %v1411_v63  ;;  %v205_v15 = vmul.f32 %v844_v23, %v1292_v28  ;;  %v68_v63 = vld [vmem:[#allocation6 + $0x38] sm:$0xff] }
  0x85   :  { %v578_v40 = vadd.f32 %v570_v14, %v562_v33  ;;  %v315_v10 = vmul.f32 %v307_v34, %v1242_v4  ;;  %v384_v1 = vmul.f32 %v376_v11, %v1242_v4  ;;  %v265_v58 = vmul.f32 %v935_v8, %v1292_v28  ;;  %v77_v55 = vld [vmem:[#allocation6 + $0x78] sm:$0xff] }
  0x86   :  { %v461_v5 = vadd.f32 %v882_v37, %v452_v7  ;;  %v537_v53 = vmul.f32 %v529_v59, %v1242_v4  ;;  %v334_v44 = vmul.f32 %v917_v60, %v1292_v28  ;;  %v124_v57 = vsub.f32 2.0, %v116_v47 }
  0x87   :  { %v586_v39 = vmul.f32 %v578_v40, %v1192_v32  ;;  %v324_v21 = vadd.f32 %v912_v56, %v315_v10  ;;  %v393_v50 = vadd.f32 %v899_v46, %v384_v1  ;;  %v238_v32 = vmul.f32 %v230_v54, %v1242_v4 }
  0x88   :  { %v469_v9 = vmul.f32 %v461_v5, %v1242_v4  ;;  %v546_v49 = vadd.f32 %v850_v25, %v537_v53  ;;  %v274_v17 = vadd.f32 %v943_v12, %v265_v58  ;;  %v343_v0 = vadd.f32 %v896_v45, %v334_v44 }
  0x89   :  { %v594_v20 = vadd.f32 %v586_v39, %v254_v43  ;;  %v401_v13 = vmul.f32 %v324_v21, %v1290_v62  ;;  %v419_v16 = vmul.f32 %v876_v35, %v1292_v28  ;;  %v85_v29 = vmul.f32 0.273, %v68_v63 }
  0x8a   :  { %v214_v33 = vadd.f32 %v847_v24, %v205_v15  ;;  %v282_v52 = vmul.f32 %v274_v17, %v1292_v28  ;;  %v351_v48 = vmul.f32 %v343_v0, %v1292_v28  ;;  %v504_v22 = vmul.f32 %v885_v38, %v1292_v28 }
  0x8b   :  { %602 = vst [vmem:[#allocation7 + $0x20] sm:$0xff] %v594_v20  ;;  %v409_v3 = vadd.f32 %v401_v13, %v393_v50  ;;  %v478_v14 = vadd.f32 %v866_v30, %v469_v9  ;;  %v554_v34 = vmul.f32 %v546_v49, %v1242_v4  ;;  %v428_v11 = vadd.f32 %v893_v42, %v419_v16 }
  0x8c   :  { %v247_v7 = vadd.f32 %v838_v19, %v238_v32  ;;  %v291_v59 = vadd.f32 %v925_v2, %v282_v52  ;;  %v360_v43 = vadd.f32 %v905_v51, %v351_v48  ;;  %v513_v40 = vadd.f32 %v856_v26, %v504_v22 }
  0x8d   :  { %v486_v54 = vmul.f32 %v409_v3, %v1290_v62  ;;  %v132_v47 = vmul.f32 %v677_v61, %v124_v57  ;;  %v436_v10 = vmul.f32 %v428_v11, %v1292_v28  ;;  %v149_v1 = vadd.f32 1.0, %v77_v55 }
  0x8e   :  { %v222_v5 = vmul.f32 %v214_v33, %v1292_v28  ;;  %v299_v53 = vmul.f32 %v291_v59, %v1292_v28  ;;  %v368_v39 = vmul.f32 %v360_v43, %v1292_v28  ;;  %v521_v15 = vmul.f32 %v513_v40, %v1292_v28 }
  0x8f   :  { %v494_v58 = vadd.f32 %v486_v54, %v478_v14  ;;  %v563_v44 = vadd.f32 %v859_v27, %v554_v34  ;;  %v445_v21 = vadd.f32 %v879_v36, %v436_v10  ;;  %v93_v50 = vmul.f32 %v85_v29, %v68_v63 }
  0x90   :  { %v308_v9 = vadd.f32 %v931_v6, %v299_v53  ;;  %v377_v61 = vadd.f32 %v890_v41, %v368_v39  ;;  %v530_v49 = vadd.f32 %v869_v31, %v521_v15  ;;  %678 = vrcp.f32 %v149_v1 }
  0x91   :  { %v571_v20 = vmul.f32 %v494_v58, %v1290_v62  ;;  %v453_v32 = vmul.f32 %v445_v21, %v1292_v28  ;;  %v140_v17 = vsub.f32 1.0, %v132_v47  ;;  %v255_v63 = vmul.f32 %v247_v7, %v1242_v4 }
  0x92   :  { %v316_v0 = vmul.f32 %v308_v9, %v1292_v28  ;;  %v385_v13 = vmul.f32 %v377_v61, %v1292_v28  ;;  %v538_v57 = vmul.f32 %v530_v49, %v1292_v28  ;;  %v231_v29 = vadd.f32 %v835_v18, %v222_v5 }
  0x93   :  { %v579_v16 = vadd.f32 %v571_v20, %v563_v44  ;;  %v462_v33 = vadd.f32 %v882_v37, %v453_v32  ;;  %v101_v55 = vadd.f32 1.0, %v93_v50 }
  0x94   :  { %v325_v52 = vadd.f32 %v912_v56, %v316_v0  ;;  %v394_v48 = vadd.f32 %v899_v46, %v385_v13  ;;  %v547_v22 = vadd.f32 %v850_v25, %v538_v57  ;;  %v239_v4 = vmul.f32 %v231_v29, %v1292_v28 }
  0x95   :  { %v587_v3 = vmul.f32 %v579_v16, %v1290_v62  ;;  %v470_v14 = vmul.f32 %v462_v33, %v1292_v28  ;;  %680 = vrcp.f32 %v101_v55 }
  0x96   :  { %v402_v34 = vmul.f32 %v325_v52, %v140_v17  ;;  %v555_v43 = vmul.f32 %v547_v22, %v1292_v28  ;;  %v248_v10 = vadd.f32 %v838_v19, %v239_v4 }
  0x97   :  { %v595_v11 = vadd.f32 %v587_v3, %v255_v63  ;;  %v479_v59 = vadd.f32 %v866_v30, %v470_v14 }
  0x98   :  { %v410_v7 = vadd.f32 %v402_v34, %v394_v48  ;;  %v564_v62 = vadd.f32 %v859_v27, %v555_v43  ;;  %v256_v58 = vmul.f32 %v248_v10, %v1292_v28 }
  0x99   :  { %603 = vst [vmem:[#allocation7 + $0x28] sm:$0xff] %v595_v11 }
  0x9a   :  { %v679_v40 = vpop.eup %678  ;;  %v487_v54 = vmul.f32 %v410_v7, %v140_v17 }
  0x9b   :  { %v165_v47 = vmul.f32 %v679_v40, %v149_v1 }
  0x9c   :  { %v495_v5 = vadd.f32 %v487_v54, %v479_v59 }
  0x9d   :  { %v173_v53 = vsub.f32 2.0, %v165_v47 }
  0x9e   :  { %v572_v39 = vmul.f32 %v495_v5, %v140_v17 }
  0x9f   :  { %v181_v15 = vmul.f32 %v679_v40, %v173_v53  ;;  %v681_v50 = vpop.eup %680 }
  0xa0   :  { %v580_v44 = vadd.f32 %v572_v39, %v564_v62  ;;  %v117_v20 = vmul.f32 %v681_v50, %v101_v55 }
  0xa1   :  { %v189_v21 = vmul.f32 2.0, %v181_v15 }
  0xa2   :  { %v588_v9 = vmul.f32 %v580_v44, %v140_v17  ;;  %v125_v29 = vsub.f32 2.0, %v117_v20 }
  0xa3   :  { %v197_v61 = vsub.f32 1.0, %v189_v21 }
  0xa4   :  { %v596_v49 = vadd.f32 %v588_v9, %v256_v58 }
  0xa5   :  { %v266_v32 = vmul.f32 %v935_v8, %v197_v61  ;;  %v335_v1 = vmul.f32 %v917_v60, %v197_v61  ;;  %v420_v0 = vmul.f32 %v876_v35, %v197_v61  ;;  %v206_v13 = vmul.f32 %v844_v23, %v197_v61 }
  0xa6   :  { %604 = vst [vmem:[#allocation7 + $0x30] sm:$0xff] %v596_v49  ;;  %v505_v57 = vmul.f32 %v885_v38, %v197_v61 }
  0xa7   :  { %v275_v28 = vadd.f32 %v943_v12, %v266_v32  ;;  %v344_v63 = vadd.f32 %v896_v45, %v335_v1  ;;  %v429_v17 = vadd.f32 %v893_v42, %v420_v0  ;;  %v215_v60 = vadd.f32 %v847_v24, %v206_v13 }
  0xa8   :  { %v514_v16 = vadd.f32 %v856_v26, %v505_v57  ;;  %v133_v45 = vmul.f32 %v681_v50, %v125_v29 }
  0xa9   :  { %v283_v33 = vmul.f32 %v275_v28, %v197_v61  ;;  %v352_v8 = vmul.f32 %v344_v63, %v197_v61  ;;  %v437_v52 = vmul.f32 %v429_v17, %v197_v61  ;;  %v223_v26 = vmul.f32 %v215_v60, %v197_v61 }
  0xaa   :  { %v522_v35 = vmul.f32 %v514_v16, %v197_v61  ;;  %v141_v11 = vsub.f32 1.0, %v133_v45 }
  0xab   :  { %v292_v48 = vadd.f32 %v925_v2, %v283_v33  ;;  %v361_v23 = vadd.f32 %v905_v51, %v352_v8  ;;  %v446_v38 = vadd.f32 %v879_v36, %v437_v52  ;;  %v232_v51 = vadd.f32 %v835_v18, %v223_v26 }
  0xac   :  { %v531_v12 = vadd.f32 %v869_v31, %v522_v35 }
  0xad   :  { %v300_v22 = vmul.f32 %v292_v48, %v197_v61  ;;  %v369_v42 = vmul.f32 %v361_v23, %v197_v61  ;;  %v454_v55 = vmul.f32 %v446_v38, %v197_v61  ;;  %v240_v40 = vmul.f32 %v232_v51, %v197_v61 }
  0xae   :  { %v539_v34 = vmul.f32 %v531_v12, %v197_v61 }
  0xaf   :  { %v309_v3 = vadd.f32 %v931_v6, %v300_v22  ;;  %v378_v14 = vadd.f32 %v890_v41, %v369_v42  ;;  %v463_v24 = vadd.f32 %v882_v37, %v454_v55  ;;  %v249_v47 = vadd.f32 %v838_v19, %v240_v40 }
  0xb0   :  { %v548_v59 = vadd.f32 %v850_v25, %v539_v34 }
  0xb1   :  { %v317_v2 = vmul.f32 %v309_v3, %v197_v61  ;;  %v386_v4 = vmul.f32 %v378_v14, %v197_v61  ;;  %v471_v7 = vmul.f32 %v463_v24, %v197_v61  ;;  %v257_v62 = vmul.f32 %v249_v47, %v197_v61 }
  0xb2   :  { %v556_v54 = vmul.f32 %v548_v59, %v197_v61 }
  0xb3   :  { %v326_v36 = vadd.f32 %v912_v56, %v317_v2  ;;  %v395_v31 = vadd.f32 %v899_v46, %v386_v4  ;;  %v480_v41 = vadd.f32 %v866_v30, %v471_v7 }
  0xb4   :  { %v565_v5 = vadd.f32 %v859_v27, %v556_v54 }
  0xb5   :  { %v403_v43 = vmul.f32 %v326_v36, %v141_v11 }
  0xb7   :  { %v411_v6 = vadd.f32 %v403_v43, %v395_v31 }
  0xb9   :  { %v488_v37 = vmul.f32 %v411_v6, %v141_v11 }
  0xbb   :  { %v496_v10 = vadd.f32 %v488_v37, %v480_v41 }
  0xbd   :  { %v573_v18 = vmul.f32 %v496_v10, %v141_v11 }
  0xbf   :  { %v581_v56 = vadd.f32 %v573_v18, %v565_v5 }
  0xc1   :  { %v589_v46 = vmul.f32 %v581_v56, %v141_v11 }
  0xc3   :  { %v597_v53 = vadd.f32 %v589_v46, %v257_v62 }
  0xc5   :  { %605 = vst [vmem:[#allocation7 + $0x38] sm:$0xff] %v597_v53 }
  0xc6   :  { %725 = shalt.err (!%p722_p1)
}
  0xc7   :  { %s726_s3 = scalar_lea.hbm %s1402_s2, 1024 }
  0xc8   :  { %p727_p2 = scmp.ne.s32.totalorder %s1402_s2, %s726_s3  ;;  %p730_p3 = scmp.lt.u32.totalorder %s726_s3, %s1402_s2 }
  0xca   :  { %p732_p4 = pnand %p730_p3, %p727_p2 }
  0xcc   :  { %735 = shalt.err (!%p732_p4)
}
  0xcd   :  { %615 = dma.vmem_to_hbm [thread:$0]  %s613_s28, 1024, %s1402_s2, [#allocation4]  }
  0xce   :  { %740 = dma.done.wait [#allocation4], 1024  }
  0xcf   :  { %741 = vsyncadd [#allocation4], 4294966272 }
  0xd0   :  { %619 = vsyncpa [#allocation3], 1 }
  0xd1   :  { %620 = vsyncpa [#allocation4], 1 }
  0xd2   :  { %621 = vsyncpa [#allocation5], 1 }

</bundles_post_ra>
